<compile_context>
chip_gen: v5e
topology: v5e:2x2
jax: 0.10.0
libtpu: 0.0.40
codegen_flags: <defaults>
</compile_context>

<pallas_src>
import jax
import jax.numpy as jnp
from jax.experimental import pallas as pl
from jax.experimental.pallas import tpu as pltpu


# --------------------------------------------------------------------------- #
# Kernel body
# --------------------------------------------------------------------------- #
def _postprocess_kernel(x_ref, cm_ref, mask_prob_ref, char_soft_ref):
    # --- sigmoid(x) ---------------------------------------------------------
    xv = x_ref[...].astype(jnp.float32)                    # (TN, HW)  cast on VPU
    sig = pl.reciprocal(1.0 + jnp.exp(-xv), approx=False)  # EUP exp + exact rcp
    mask_prob_ref[...] = sig.astype(mask_prob_ref.dtype)

    # --- softmax(char_mask, axis=1) -----------------------------------------
    cm = cm_ref[...].astype(jnp.float32)                   # (TN, C, HW)
    m = jnp.max(cm, axis=1, keepdims=True)                 # (TN, 1, HW)  XLU reduce
    e = jnp.exp(cm - m)                                    # (TN, C, HW)  EUP
    s = jnp.sum(e, axis=1, keepdims=True)                  # (TN, 1, HW)
    inv_s = pl.reciprocal(s, approx=False)                 # exact: DMA-bound anyway
    char_soft_ref[...] = (e * inv_s).astype(char_soft_ref.dtype)


# --------------------------------------------------------------------------- #
# Tiling helpers
# --------------------------------------------------------------------------- #
def _round_up(v, m):
    return ((v + m - 1) // m) * m


def _tpu_generation_params():
    """(io_bytes_budget, vmem_limit_bytes), tuned per TPU generation.

    v7x (64 MiB per-TC VMEM, ~3.2 TB/s HBM): bigger steps amortize the
    ~0.35 us/step pipeline overhead, but the budget must keep double-buffered
    in/out blocks plus the f32 exp temps under 64 MiB.
    v5e/v6e (128 MiB VMEM, slower HBM): 8 MiB/step is already >=6 us of DMA.
    """
    try:
        vmem_cap = pltpu.get_tpu_info().vmem_capacity_bytes
    except Exception:
        vmem_cap = None
    if vmem_cap is not None and vmem_cap <= (64 << 20):
        # v7x-class: 12 MiB/step keeps 2x(in)+2x(out) + 2x f32 temps ~ 48 MiB.
        return 12 << 20, 56 << 20
    # v5e / v6e (or unknown): conservative defaults valid on every generation.
    return 8 << 20, 48 << 20


def _choose_tiling(N, C, HW, in_itemsize, out_itemsize, align, io_bytes_budget):
    """Pick (tile_n, num_steps, padded_N).

    * tile_n is sublane-aligned (8 rows/vreg for f32 tiles, 16 for bf16).
    * Each step moves <= io_bytes_budget of read+write traffic.
    * Step count is kept even / near-equal where possible so v7x megacore
      shards the "parallel" grid axis across its 2 TCs without idling one.
    """
    per_image_io = max(1, (C + 1) * HW * (in_itemsize + out_itemsize))
    tn_budget = max(align, (io_bytes_budget // per_image_io) // align * align)

    if tn_budget >= N:
        if N > align:
            # Whole batch fits one step's budget: split into 2 equal aligned
            # steps so both TCs get work (e.g. N=20 -> 16+16(pad), not 16+4).
            tn = _round_up(pl.cdiv(N, 2), align)
        else:
            tn = _round_up(N, align)
    else:
        tn = tn_budget
        n_steps = pl.cdiv(N, tn)
        if n_steps % 2:
            n_steps += 1                       # even step count -> balanced TCs
        tn = max(align, _round_up(pl.cdiv(N, n_steps), align))

    n_steps = pl.cdiv(N, tn)
    return tn, n_steps, n_steps * tn


# --------------------------------------------------------------------------- #
# Pallas wrapper
# --------------------------------------------------------------------------- #
def char_mask_postprocess_pallas(x, char_mask, *,
                                 mask_out_dtype=jnp.float32,
                                 char_out_dtype=jnp.bfloat16,
                                 io_bytes_budget=None,
                                 alias_char_mask_output=False):
    """sigmoid(x) and softmax(char_mask, axis=1) in a single Pallas pass.

    x         : [N, 1, H, W]  mask logits (any float dtype; ingested natively)
    char_mask : [N, C, H, W]  char mask logits (any float dtype)
    returns   : (mask_prob [N,1,H,W] mask_out_dtype,
                 char_mask_softmax [N,C,H,W] char_out_dtype)

    char_out_dtype defaults to bfloat16: the [N,C,HW] write is ~half of all
    HBM traffic, and bf16 halves it.  Pass jnp.float32 if exact f32 softmax is
    required downstream.

    alias_char_mask_output: alias char_mask's buffer to the softmax output via
        input_output_aliases.  Only takes effect when char_out_dtype matches
        char_mask.dtype AND no padding is needed AND the caller donates
        char_mask; otherwise it is silently skipped (no footprint saving).
    """
    N, one, H, W = x.shape
    assert one == 1, "mask logits expected with a single channel"
    Nc, C, Hc, Wc = char_mask.shape
    assert (Nc, Hc, Wc) == (N, H, W)
    HW = H * W
    HW_pad = _round_up(HW, 128)                 # lane-dense, unmasked stores

    default_budget, vmem_limit = _tpu_generation_params()
    if io_bytes_budget is None:
        io_bytes_budget = default_budget

    in_itemsize = max(jnp.dtype(x.dtype).itemsize, jnp.dtype(char_mask.dtype).itemsize)
    out_itemsize = max(jnp.dtype(mask_out_dtype).itemsize, jnp.dtype(char_out_dtype).itemsize)
    # sublane pack: 8 rows/vreg at 32-bit, 16 at 16-bit, 32 at 8-bit
    align = max(8, 32 // min(jnp.dtype(x.dtype).itemsize,
                             jnp.dtype(char_mask.dtype).itemsize,
                             out_itemsize))

    tn, n_steps, N_pad = _choose_tiling(N, C, HW_pad, in_itemsize, out_itemsize,
                                        align, io_bytes_budget)

    # Native dtype in; flatten (free bitcast reshape); pad only when needed so
    # every DMA is full-sized and every store is lane/sublane dense.
    x_flat = x.reshape(N, HW)
    cm_flat = char_mask.reshape(N, C, HW)
    padded = (N_pad != N) or (HW_pad != HW)
    if padded:
        x_flat = jnp.pad(x_flat, ((0, N_pad - N), (0, HW_pad - HW)))
        cm_flat = jnp.pad(cm_flat, ((0, N_pad - N), (0, 0), (0, HW_pad - HW)))

    grid_spec = pltpu.PrefetchScalarGridSpec(
        num_scalar_prefetch=0,
        grid=(n_steps,),
        in_specs=[
            pl.BlockSpec((tn, HW_pad), lambda i: (i, 0)),
            pl.BlockSpec((tn, C, HW_pad), lambda i: (i, 0, 0)),
        ],
        out_specs=[
            pl.BlockSpec((tn, HW_pad), lambda i: (i, 0)),
            pl.BlockSpec((tn, C, HW_pad), lambda i: (i, 0, 0)),
        ],
    )

    aliases = {}
    if (alias_char_mask_output and not padded
            and jnp.dtype(char_out_dtype) == cm_flat.dtype):
        aliases = {1: 1}  # char_mask input buffer -> softmax output buffer

    in_bytes = (x_flat.size * x_flat.dtype.itemsize
                + cm_flat.size * cm_flat.dtype.itemsize)
    out_bytes = (N_pad * HW_pad * jnp.dtype(mask_out_dtype).itemsize
                 + N_pad * C * HW_pad * jnp.dtype(char_out_dtype).itemsize)
    cost = pl.CostEstimate(
        flops=6 * N_pad * C * HW_pad,                     # sub/mul/reduce work
        transcendentals=N_pad * (C + 1) * HW_pad,         # exp per element
        bytes_accessed=in_bytes + out_bytes,
    )

    mask_prob, char_soft = pl.pallas_call(
        _postprocess_kernel,
        out_shape=(
            jax.ShapeDtypeStruct((N_pad, HW_pad), mask_out_dtype),
            jax.ShapeDtypeStruct((N_pad, C, HW_pad), char_out_dtype),
        ),
        grid_spec=grid_spec,
        compiler_params=pltpu.CompilerParams(
            dimension_semantics=("parallel",),
            vmem_limit_bytes=vmem_limit,
        ),
        cost_estimate=cost,
        input_output_aliases=aliases,
    )(x_flat, cm_flat)

    if padded:
        mask_prob = mask_prob[:N, :HW]
        char_soft = char_soft[:N, :, :HW]
    return mask_prob.reshape(N, 1, H, W), char_soft.reshape(N, C, H, W)


# --------------------------------------------------------------------------- #
# Module-level glue (mirrors CharMaskPostProcessor.forward)
# --------------------------------------------------------------------------- #
def char_mask_post_processor_forward(x, char_mask, boxes,
                                     seq_outputs=None, seq_scores=None,
                                     detailed_seq_scores=None):
    """`boxes` is a list of dicts: {'bbox': [M,4], 'size': (W,H), 'fields': {...}}
    (a minimal stand-in for BoxList)."""
    # mask_prob kept f32 (thresholding downstream); char softmax emitted bf16
    # to halve the dominant HBM write.
    mask_prob, char_mask_softmax = char_mask_postprocess_pallas(
        x, char_mask, mask_out_dtype=jnp.float32, char_out_dtype=jnp.bfloat16)

    # mask_prob.squeeze(dim=1)[:, None] -> shape preserved for single channel
    mask_prob = mask_prob[:, 0][:, None]

    # The PyTorch module does .cpu().numpy() here; keep results on device and
    # let callers jax.device_get lazily (a full [N,C,H,W] PCIe copy dwarfs the
    # kernel time).
    char_results = {
        'char_mask': char_mask_softmax,
        'boxes': boxes[0]['bbox'],
        'seq_outputs': seq_outputs,
        'seq_scores': seq_scores,
        'detailed_seq_scores': detailed_seq_scores,
    }

    # TODO(synk): optional `masker` (projecting masks into image coords) is
    # geometric resampling outside the CNN hot path; not implemented here.
    boxes_per_image = [b['bbox'].shape[0] for b in boxes]
    splits, start = [], 0
    for n in boxes_per_image:
        splits.append(mask_prob[start:start + n])
        start += n

    results = []
    for prob, box in zip(splits, boxes):
        bbox = {'bbox': box['bbox'], 'size': box['size'], 'mode': 'xyxy',
                'fields': dict(box.get('fields', {}))}
        bbox['fields']['mask'] = prob
        results.append(bbox)
    return [results, char_results]


# --------------------------------------------------------------------------- #
# Self-test
# --------------------------------------------------------------------------- #
if __name__ == "__main__":
    key = jax.random.PRNGKey(0)
    k1, k2, k3 = jax.random.split(key, 3)

    # Small, module-consistent shapes: N masks, 1-channel mask logits,
    # C char classes, HxW spatial.
    N, C, H, W = 2, 8, 16, 16
    x = jax.random.normal(k1, (N, 1, H, W), dtype=jnp.float32)
    char_mask = jax.random.normal(k2, (N, C, H, W), dtype=jnp.float32)

    bbox = jax.random.uniform(k3, (N, 4), dtype=jnp.float32) * 100.0
    boxes = [{'bbox': bbox, 'size': (128, 128), 'fields': {}}]

    ref_sig = jax.nn.sigmoid(x)
    ref_soft = jax.nn.softmax(char_mask, axis=1)

    results, char_results = char_mask_post_processor_forward(x, char_mask, boxes)
    mask_field = results[0]['fields']['mask']
    jax.block_until_ready(mask_field)
    jax.block_until_ready(char_results['char_mask'])

    assert mask_field.shape == (N, 1, H, W) and mask_field.dtype == jnp.float32
    assert char_results['char_mask'].shape == (N, C, H, W)
    # mask_prob: f32 compute + exact reciprocal -> tight tolerance
    assert jnp.allclose(mask_field, ref_sig, atol=1e-5, rtol=1e-5)
    # char softmax emitted in bf16 -> bf16-level tolerance
    assert jnp.allclose(char_results['char_mask'].astype(jnp.float32),
                        ref_soft, atol=1e-2, rtol=1e-2)

    # Exercise bf16 ingestion + ragged batch (N not a multiple of the tile,
    # tiny per-step budget forces multiple balanced, padded steps).
    N2 = 20
    x2 = jax.random.normal(k1, (N2, 1, H, W), dtype=jnp.float32).astype(jnp.bfloat16)
    cm2 = jax.random.normal(k2, (N2, C, H, W), dtype=jnp.float32).astype(jnp.bfloat16)
    ref_sig2 = jax.nn.sigmoid(x2.astype(jnp.float32))
    ref_soft2 = jax.nn.softmax(cm2.astype(jnp.float32), axis=1)
    mp2, cs2 = char_mask_postprocess_pallas(
        x2, cm2, mask_out_dtype=jnp.float32, char_out_dtype=jnp.bfloat16,
        io_bytes_budget=1 << 16)
    jax.block_until_ready(cs2)
    assert mp2.shape == (N2, 1, H, W) and cs2.shape == (N2, C, H, W)
    assert jnp.allclose(mp2, ref_sig2, atol=1e-5, rtol=1e-5)
    assert jnp.allclose(cs2.astype(jnp.float32), ref_soft2, atol=1e-2, rtol=1e-2)

    # f32-everywhere path (char_out_dtype=f32) for exact-softmax callers.
    mp3, cs3 = char_mask_postprocess_pallas(
        x, char_mask, mask_out_dtype=jnp.float32, char_out_dtype=jnp.float32)
    jax.block_until_ready(cs3)
    assert jnp.allclose(cs3, ref_soft, atol=1e-5, rtol=1e-5)

    print("KERNEL_OK")
</pallas_src>

<mosaic_0001>
module attributes {stable_mosaic.version = 11 : i64} {
  func.func @_postprocess_kernel(%arg0: i32, %arg1: memref<8x256xf32, #tpu.memory_space<vmem>>, %arg2: memref<8x8x256xf32, #tpu.memory_space<vmem>>, %arg3: memref<8x256xf32, #tpu.memory_space<vmem>>, %arg4: memref<8x8x256xbf16, #tpu.memory_space<vmem>>) attributes {dimension_semantics = [#tpu.dimension_semantics<parallel>], iteration_bounds = array<i64: 1>, scalar_prefetch = 0 : i64, scratch_operands = 0 : i64, tpu.core_type = #tpu.core_type<tc>, window_params = [{transform_indices = @transform_0, window_bounds = array<i64: 8, 256>}, {transform_indices = @transform_1, window_bounds = array<i64: 8, 8, 256>}, {transform_indices = @transform_2, window_bounds = array<i64: 8, 256>}, {transform_indices = @transform_3, window_bounds = array<i64: 8, 8, 256>}]} {
    %c0 = arith.constant 0 : index
    %c0_0 = arith.constant 0 : index
    %0 = vector.load %arg1[%c0, %c0_0] : memref<8x256xf32, #tpu.memory_space<vmem>>, vector<8x256xf32>
    %cst = arith.constant 0.000000e+00 : f32
    %1 = vector.broadcast %cst : f32 to vector<8x256xf32>
    %2 = arith.subf %1, %0 : vector<8x256xf32>
    %3 = math.exp %2 : vector<8x256xf32>
    %cst_1 = arith.constant 1.000000e+00 : f32
    %4 = vector.broadcast %cst_1 : f32 to vector<8x256xf32>
    %5 = arith.addf %4, %3 : vector<8x256xf32>
    %6 = tpu.reciprocal %5 : vector<8x256xf32> -> vector<8x256xf32>
    %c0_2 = arith.constant 0 : index
    %c0_3 = arith.constant 0 : index
    %7 = vector.load %arg3[%c0_2, %c0_3] : memref<8x256xf32, #tpu.memory_space<vmem>>, vector<8x256xf32>
    tpu.vector_store %arg3[%c0_2, %c0_3], %6 {strides = array<i32>} : memref<8x256xf32, #tpu.memory_space<vmem>>, vector<8x256xf32>,
    %c0_4 = arith.constant 0 : index
    %c0_5 = arith.constant 0 : index
    %c0_6 = arith.constant 0 : index
    %8 = vector.load %arg2[%c0_4, %c0_5, %c0_6] : memref<8x8x256xf32, #tpu.memory_space<vmem>>, vector<8x8x256xf32>
    %cst_7 = arith.constant dense<0xFF800000> : vector<8x256xf32>
    %9 = vector.multi_reduction <maximumf>, %8, %cst_7 [1] : vector<8x8x256xf32> to vector<8x256xf32>
    %10 = vector.shape_cast %9 : vector<8x256xf32> to vector<8x1x256xf32>
    %11 = vector.broadcast %10 : vector<8x1x256xf32> to vector<8x8x256xf32>
    %12 = arith.subf %8, %11 : vector<8x8x256xf32>
    %13 = math.exp %12 : vector<8x8x256xf32>
    %cst_8 = arith.constant dense<0.000000e+00> : vector<8x256xf32>
    %14 = vector.multi_reduction <add>, %13, %cst_8 [1] : vector<8x8x256xf32> to vector<8x256xf32>
    %15 = vector.shape_cast %14 : vector<8x256xf32> to vector<8x1x256xf32>
    %16 = tpu.reciprocal %15 : vector<8x1x256xf32> -> vector<8x1x256xf32>
    %17 = vector.broadcast %16 : vector<8x1x256xf32> to vector<8x8x256xf32>
    %18 = arith.mulf %13, %17 : vector<8x8x256xf32>
    %19 = arith.truncf %18 : vector<8x8x256xf32> to vector<8x8x256xbf16>
    %c0_9 = arith.constant 0 : index
    %c0_10 = arith.constant 0 : index
    %c0_11 = arith.constant 0 : index
    %20 = vector.load %arg4[%c0_9, %c0_10, %c0_11] : memref<8x8x256xbf16, #tpu.memory_space<vmem>>, vector<8x8x256xbf16>
    tpu.vector_store %arg4[%c0_9, %c0_10, %c0_11], %19 {strides = array<i32>} : memref<8x8x256xbf16, #tpu.memory_space<vmem>>, vector<8x8x256xbf16>,
    return
  }
  func.func @transform_0(%arg0: i32) -> (i32, i32) {
    %c0_i32 = arith.constant 0 : i32
    %c0_i32_0 = arith.constant 0 : i32
    return %arg0, %c0_i32 : i32, i32
  }
  func.func @transform_1(%arg0: i32) -> (i32, i32, i32) {
    %c0_i32 = arith.constant 0 : i32
    %c0_i32_0 = arith.constant 0 : i32
    %c0_i32_1 = arith.constant 0 : i32
    return %arg0, %c0_i32, %c0_i32_0 : i32, i32, i32
  }
  func.func @transform_2(%arg0: i32) -> (i32, i32) {
    %c0_i32 = arith.constant 0 : i32
    %c0_i32_0 = arith.constant 0 : i32
    return %arg0, %c0_i32 : i32, i32
  }
  func.func @transform_3(%arg0: i32) -> (i32, i32, i32) {
    %c0_i32 = arith.constant 0 : i32
    %c0_i32_0 = arith.constant 0 : i32
    %c0_i32_1 = arith.constant 0 : i32
    return %arg0, %c0_i32, %c0_i32_0 : i32, i32, i32
  }
}

</mosaic_0001>

<bundles_post_ra>
// kernel: tpu_custom_call.1
= control target key start
LH: loop header
LB: loop body
LE: loop exit
PB: predicated region body
PF: predicated region fallthrough
CT: control target
= control target key end

     0   :  { %9 = vsyncpa [#allocation3], 0  ;;  %s1326_s0 = inlined_call_operand.hbm [shape: f32[8,256], index: 0, kind: input, shape index: {}]   ;;  %s1327_s1 = inlined_call_operand.hbm [shape: f32[8,8,256], index: 1, kind: input, shape index: {}]   ;;  %s1328_s2 = inlined_call_operand.hbm [shape: f32[8,256], index: 2, kind: output, shape index: {0}]   ;;  %s1329_s3 = inlined_call_operand.hbm [shape: bf16[8,8,256], index: 3, kind: output, shape index: {1}]  }
   0x1   :  { %10 = vsyncpa [#allocation6], 0 }
   0x2   :  { %11 = vsyncpa [#allocation4], 0 }
   0x3   :  { %12 = vsyncpa [#allocation9], 0  ;;  %s18_s14 = sshll.u32 %s1326_s0, 4  ;;  %s817_s15 = smov [#allocation2]   ;;  %s19_s14 = int_to_ptr.hbm [resolvable:$true] %s18_s14 }
   0x4   :  { %s20_s16 = sshll.u32 %s817_s15, 4  ;;  %s28_s19 = sshll.u32 %s1327_s1, 4  ;;  %s21_s16 = int_to_ptr.vmem [resolvable:$true] %s20_s16  ;;  %s29_s19 = int_to_ptr.hbm [resolvable:$true] %s28_s19 }
   0x5   :  { %23 = dma.hbm_to_vmem [thread:$0]  %s19_s14, 256, %s21_s16, [#allocation3]  }
   0x6   :  { %s818_s20 = smov [#allocation5]   ;;  %s819_s22 = smov 256  }
   0x7   :  { %s30_s21 = sshll.u32 %s818_s20, 4  ;;  %s820_s23 = smov 16   ;;  %s31_s21 = int_to_ptr.vmem [resolvable:$true] %s30_s21 }
   0x8   :  { %36 = dma.hbm_to_vmem [thread:$0]  %s29_s19, 2048, %s31_s21, [#allocation6], %s819_s22, %s819_s22, %s820_s23  }
   0x9   :  { %809 = dma.done.wait [#allocation3], 256  }
   0xa   :  { %810 = vsyncadd [#allocation3], 4294967040 }
   0xb   :  { %811 = dma.done.wait [#allocation6], 2048  }
   0xc   :  { %812 = vsyncadd [#allocation6], 4294965248  ;;  %v45_v0 = vld [vmem:[#allocation2] sm:$0xff]  ;;  %v46_v1 = vld [vmem:[#allocation2 + $0x8] sm:$0xff]  ;;  %s821_s0 = smov [#allocation7]   ;;  %s604_s26 = sshll.u32 %s1328_s2, 4  ;;  %s605_s26 = int_to_ptr.hbm [resolvable:$true] %s604_s26 }
   0xd   :  { %v851_v2 = vld [vmem:[#allocation5] sm:$0xff]  ;;  %v47_v3 = vsub.f32 0.0, %v45_v0  ;;  %v48_v4 = vsub.f32 0.0, %v46_v1  ;;  %v853_v5 = vld [vmem:[#allocation5 + $0x8] sm:$0xff]  ;;  %v856_v7 = vld [vmem:[#allocation5 + $0x10] sm:$0xff]  ;;  %s934_s1 = sshll.u32 %s821_s0, 4  ;;  %s603_s1 = int_to_ptr.vmem [resolvable:$true] %s934_s1 }
   0xe   :  { %v101_v6 = vrot.slane %v851_v2, 4  ;;  %v858_v8 = vld [vmem:[#allocation5 + $0x18] sm:$0xff]  ;;  %v107_v9 = vrot.slane %v853_v5, 4  ;;  %v113_v10 = vrot.slane %v856_v7, 4  ;;  %v863_v12 = vld [vmem:[#allocation5 + $0x20] sm:$0xff]  ;;  %v865_v13 = vld [vmem:[#allocation5 + $0x28] sm:$0xff] }
   0xf   :  { %v119_v11 = vrot.slane %v858_v8, 4  ;;  %v867_v14 = vld [vmem:[#allocation5 + $0x30] sm:$0xff]  ;;  %v49_v15 = vmul.f32 1.442695, %v47_v3  ;;  %v51_v16 = vmul.f32 1.442695, %v48_v4 }
  0x10   :  { %v102_v17 = vmax.f32 %v851_v2, %v101_v6  ;;  %v125_v18 = vrot.slane %v863_v12, 4  ;;  %v108_v19 = vmax.f32 %v853_v5, %v107_v9  ;;  %v114_v20 = vmax.f32 %v856_v7, %v113_v10  ;;  %v878_v32 = vld [vmem:[#allocation5 + $0x38] sm:$0xff]  ;;  %v893_v4 = vld [vmem:[#allocation5 + $0x40] sm:$0xff]  ;;  %s822_s2 = smov [#allocation8]   ;;  %s614_s30 = sshll.u32 %s1329_s3, 4  ;;  %s615_s30 = int_to_ptr.hbm [resolvable:$true] %s614_s30 }
  0x11   :  { %v120_v21 = vmax.f32 %v858_v8, %v119_v11  ;;  %v131_v22 = vrot.slane %v865_v13, 4  ;;  %641 = vpow2.f32 %v49_v15  ;;  %v137_v25 = vrot.slane %v867_v14, 4  ;;  %s612_s27 = sshll.u32 %s822_s2, 4  ;;  %s823_s4 = smov 128   ;;  %s613_s27 = int_to_ptr.vmem [resolvable:$true] %s612_s27 }
  0x12   :  { %v103_v23 = vrot.slane %v102_v17, 2  ;;  %v126_v24 = vmax.f32 %v863_v12, %v125_v18  ;;  %643 = vpow2.f32 %v51_v16  ;;  %v109_v26 = vrot.slane %v108_v19, 2  ;;  %s824_s5 = smov 8  }
  0x13   :  { %v115_v27 = vrot.slane %v114_v20, 2  ;;  %v121_v28 = vrot.slane %v120_v21, 2  ;;  %v132_v31 = vmax.f32 %v865_v13, %v131_v22  ;;  %v138_v33 = vmax.f32 %v867_v14, %v137_v25 }
  0x14   :  { %v104_v29 = vmax.f32 %v102_v17, %v103_v23  ;;  %v127_v30 = vrot.slane %v126_v24, 2  ;;  %v110_v34 = vmax.f32 %v108_v19, %v109_v26  ;;  %v143_v43 = vrot.slane %v878_v32, 4 }
  0x15   :  { %v116_v35 = vmax.f32 %v114_v20, %v115_v27  ;;  %v122_v36 = vmax.f32 %v120_v21, %v121_v28  ;;  %v133_v39 = vrot.slane %v132_v31, 2  ;;  %v139_v48 = vrot.slane %v138_v33, 2  ;;  %v904_v28 = vld [vmem:[#allocation5 + $0x48] sm:$0xff] }
  0x16   :  { %v105_v37 = vrot.slane %v104_v29, 1  ;;  %v128_v38 = vmax.f32 %v126_v24, %v127_v30  ;;  %v111_v40 = vrot.slane %v110_v34, 1  ;;  %v144_v58 = vmax.f32 %v878_v32, %v143_v43 }
  0x17   :  { %v117_v41 = vrot.slane %v116_v35, 1  ;;  %v123_v42 = vrot.slane %v122_v36, 1  ;;  %v642_v44 = vpop.eup %641  ;;  %v134_v47 = vmax.f32 %v132_v31, %v133_v39  ;;  %v140_v60 = vmax.f32 %v138_v33, %v139_v48 }
  0x18   :  { %v106_v45 = vmax.f32 %v104_v29, %v105_v37  ;;  %v129_v46 = vrot.slane %v128_v38, 1  ;;  %v644_v49 = vpop.eup %643  ;;  %v53_v50 = vadd.f32 1.0, %v642_v44  ;;  %v112_v51 = vmax.f32 %v110_v34, %v111_v40 }
  0x19   :  { %v882_v52 = vadd.f32 1.0, %v644_v49  ;;  %v118_v54 = vmax.f32 %v116_v35, %v117_v41  ;;  %v124_v55 = vmax.f32 %v122_v36, %v123_v42  ;;  %v135_v57 = vrot.slane %v134_v47, 1 }
  0x1a   :  { %v197_v53 = vsub.f32 %v851_v2, %v106_v45  ;;  %645 = vrcp.f32 %v53_v50  ;;  %v130_v56 = vmax.f32 %v128_v38, %v129_v46  ;;  %vm60_vm0 = vweird.f32 %v53_v50 }
  0x1b   :  { %v64_v59 = vand.u32 2147483647, %v53_v50  ;;  %647 = vrcp.f32 %v882_v52  ;;  %v66_v61 = vand.u32 2147483648, %v53_v50  ;;  %vm74_vm1 = vweird.f32 %v882_v52 }
  0x1c   :  { %v198_v62 = vsub.f32 %v853_v5, %v112_v51  ;;  %v213_v63 = vmul.f32 1.442695, %v197_v53  ;;  %v78_v0 = vand.u32 2147483647, %v882_v52  ;;  %v80_v1 = vand.u32 2147483648, %v882_v52 }
  0x1d   :  { %v199_v2 = vsub.f32 %v856_v7, %v118_v54  ;;  %v200_v3 = vsub.f32 %v858_v8, %v124_v55  ;;  %v136_v9 = vmax.f32 %v134_v47, %v135_v57  ;;  %v201_v10 = vsub.f32 %v863_v12, %v130_v56 }
  0x1e   :  { %649 = vpow2.f32 %v213_v63  ;;  %v215_v6 = vmul.f32 1.442695, %v198_v62  ;;  %vm896_vm2 = vcmp.eq.f32.partialorder %v64_v59, 8.507059e+37  ;;  %v141_v16 = vrot.slane %v140_v60, 1 }
  0x1f   :  { %v217_v5 = vmul.f32 1.442695, %v199_v2  ;;  %v219_v15 = vmul.f32 1.442695, %v200_v3  ;;  %v145_v17 = vrot.slane %v144_v58, 2  ;;  %v202_v7 = vsub.f32 %v865_v13, %v136_v9 }
  0x20   :  { %v646_v18 = vpop.eup %645  ;;  %651 = vpow2.f32 %v215_v6  ;;  %v221_v8 = vmul.f32 1.442695, %v201_v10  ;;  %v149_v19 = vrot.slane %v893_v4, 4  ;;  %v67_v22 = vor.u32 1.1754944e-38, %v66_v61 }
  0x21   :  { %v648_v20 = vpop.eup %647  ;;  %v56_v21 = vmul.f32 %v646_v18, %v53_v50  ;;  %653 = vpow2.f32 %v217_v5  ;;  %v142_v12 = vmax.f32 %v140_v60, %v141_v16  ;;  %vm61_vm3 = vweird.f32 %v646_v18 }
  0x22   :  { %v70_v23 = vmul.f32 %v648_v20, %v882_v52  ;;  %655 = vpow2.f32 %v219_v15  ;;  %v223_v24 = vmul.f32 1.442695, %v202_v7  ;;  %v146_v26 = vmax.f32 %v144_v58, %v145_v17  ;;  %vm914_vm5 = vmor %vm60_vm0, %vm61_vm3  ;;  %v965_v15 = vld [vmem:[#allocation5 + $0x50] sm:$0xff] }
  0x23   :  { %v57_v25 = vsub.f32 1.0, %v56_v21  ;;  %657 = vpow2.f32 %v221_v8  ;;  %v203_v27 = vsub.f32 %v867_v14, %v142_v12  ;;  %vm75_vm4 = vweird.f32 %v648_v20 }
  0x24   :  { %v906_v13 = vpop.eup %649  ;;  %v71_v29 = vsub.f32 1.0, %v70_v23  ;;  %659 = vpow2.f32 %v223_v24  ;;  %v150_v30 = vmax.f32 %v893_v4, %v149_v19  ;;  %v147_v34 = vrot.slane %v146_v26, 1  ;;  %vm928_vm7 = vmor %vm74_vm1, %vm75_vm4 }
  0x25   :  { %v58_v31 = vmul.f32 %v646_v18, %v57_v25  ;;  %v245_v33 = vrot.slane %v906_v13, 4  ;;  %v225_v35 = vmul.f32 1.442695, %v203_v27  ;;  %vm918_vm6 = vcmp.eq.f32.partialorder %v78_v0, 8.507059e+37 }
  0x26   :  { %v910_v36 = vpop.eup %651  ;;  %v72_v37 = vmul.f32 %v648_v20, %v71_v29  ;;  %v81_v39 = vor.u32 1.1754944e-38, %v80_v1  ;;  %v155_v40 = vrot.slane %v904_v28, 4  ;;  %v151_v46 = vrot.slane %v150_v30, 2 }
  0x27   :  { %v923_v41 = vpop.eup %653  ;;  %v59_v42 = vadd.f32 %v646_v18, %v58_v31  ;;  %v246_v44 = vadd.f32 %v906_v13, %v245_v33  ;;  %v251_v45 = vrot.slane %v910_v36, 4  ;;  %v148_v50 = vmax.f32 %v146_v26, %v147_v34 }
  0x28   :  { %v939_v47 = vpop.eup %655  ;;  %v73_v48 = vadd.f32 %v648_v20, %v72_v37  ;;  %v257_v49 = vrot.slane %v923_v41, 4  ;;  %661 = vpow2.f32 %v225_v35  ;;  %v962_v6 = vmax.f32 %v150_v30, %v151_v46 }
  0x29   :  { %v942_v51 = vpop.eup %657  ;;  %v63_v52 = vsel %vm914_vm5, %v646_v18, %v59_v42  ;;  %v247_v53 = vrot.slane %v246_v44, 2  ;;  %v252_v54 = vadd.f32 %v910_v36, %v251_v45  ;;  %v263_v55 = vrot.slane %v939_v47, 4 }
  0x2a   :  { %v948_v56 = vpop.eup %659  ;;  %v68_v57 = vsel %vm896_vm2, %v67_v22, %v63_v52  ;;  %v77_v58 = vsel %vm928_vm7, %v648_v20, %v73_v48  ;;  %v258_v59 = vadd.f32 %v923_v41, %v257_v49  ;;  %v269_v60 = vrot.slane %v942_v51, 4 }
  0x2b   :  { %83 = vst [vmem:[#allocation7] sm:$0xff] %v68_v57  ;;  %v82_v61 = vsel %vm918_vm6, %v81_v39, %v77_v58  ;;  %v248_v62 = vadd.f32 %v247_v53, %v246_v44  ;;  %v253_v63 = vrot.slane %v252_v54, 2  ;;  %v264_v0 = vadd.f32 %v939_v47, %v263_v55 }
  0x2c   :  { %84 = vst [vmem:[#allocation7 + $0x8] sm:$0xff] %v82_v61  ;;  %v259_v1 = vrot.slane %v258_v59, 2  ;;  %v270_v2 = vadd.f32 %v942_v51, %v269_v60  ;;  %v275_v3 = vrot.slane %v948_v56, 4  ;;  %v204_v5 = vsub.f32 %v878_v32, %v148_v50 }
  0x2d   :  { %v249_v9 = vrot.slane %v248_v62, 1  ;;  %v254_v10 = vadd.f32 %v253_v63, %v252_v54  ;;  %v265_v11 = vrot.slane %v264_v0, 2  ;;  %607 = dma.vmem_to_hbm [thread:$0]  %s603_s1, 256, %s605_s26, [#allocation4]   ;;  %v973_v12 = vmax.f32 %v904_v28, %v155_v40 }
  0x2e   :  { %v967_v16 = vpop.eup %661  ;;  %v260_v17 = vadd.f32 %v259_v1, %v258_v59  ;;  %v271_v18 = vrot.slane %v270_v2, 2  ;;  %v276_v20 = vadd.f32 %v948_v56, %v275_v3  ;;  %v161_v32 = vrot.slane %v965_v15, 4 }
  0x2f   :  { %v969_v7 = vadd.f32 %v249_v9, %v248_v62  ;;  %v255_v8 = vrot.slane %v254_v10, 1  ;;  %v266_v19 = vadd.f32 %v265_v11, %v264_v0  ;;  %v227_v24 = vmul.f32 1.442695, %v204_v5 }
  0x30   :  { %v261_v21 = vrot.slane %v260_v17, 1  ;;  %v272_v22 = vadd.f32 %v271_v18, %v270_v2  ;;  %v153_v25 = vrot.slane %v962_v6, 1  ;;  %v277_v33 = vrot.slane %v276_v20, 2 }
  0x31   :  { %v976_v23 = vadd.f32 %v255_v8, %v254_v10  ;;  %663 = vrcp.f32 %v969_v7  ;;  %v350_v26 = vand.u32 2147483647, %v969_v7  ;;  %v352_v27 = vand.u32 2147483648, %v969_v7 }
  0x32   :  { %v982_v29 = vadd.f32 %v261_v21, %v260_v17  ;;  %v267_v30 = vrot.slane %v266_v19, 1  ;;  %v273_v31 = vrot.slane %v272_v22, 1  ;;  %v281_v34 = vrot.slane %v967_v16, 4 }
  0x33   :  { %665 = vrcp.f32 %v976_v23  ;;  %v364_v35 = vand.u32 2147483647, %v976_v23  ;;  %v366_v14 = vand.u32 2147483648, %v976_v23  ;;  %vm346_vm8 = vweird.f32 %v969_v7 }
  0x34   :  { %v988_v37 = vadd.f32 %v267_v30, %v266_v19  ;;  %667 = vrcp.f32 %v982_v29  ;;  %v378_v38 = vand.u32 2147483647, %v982_v29  ;;  %v380_v39 = vand.u32 2147483648, %v982_v29 }
  0x35   :  { %669 = vpow2.f32 %v227_v24  ;;  %vm994_vm9 = vcmp.eq.f32.partialorder %v350_v26, 8.507059e+37  ;;  %v353_v42 = vor.u32 1.1754944e-38, %v352_v27  ;;  %vm360_vm10 = vweird.f32 %v976_v23 }
  0x36   :  { %671 = vrcp.f32 %v988_v37  ;;  %vm374_vm11 = vweird.f32 %v982_v29  ;;  %v392_v44 = vand.u32 2147483647, %v988_v37  ;;  %v394_v45 = vand.u32 2147483648, %v988_v37 }
  0x37   :  { %v664_v43 = vpop.eup %663  ;;  %v1003_v46 = vadd.f32 %v273_v31, %v272_v22  ;;  %vm1006_vm12 = vcmp.eq.f32.partialorder %v364_v35, 8.507059e+37  ;;  %v367_v50 = vor.u32 1.1754944e-38, %v366_v14  ;;  %vm388_vm13 = vweird.f32 %v988_v37 }
  0x38   :  { %v342_v48 = vmul.f32 %v664_v43, %v969_v7  ;;  %v278_v52 = vadd.f32 %v277_v33, %v276_v20  ;;  %vm347_vm14 = vweird.f32 %v664_v43  ;;  %vm1011_vm15 = vcmp.eq.f32.partialorder %v378_v38, 8.507059e+37 }
  0x39   :  { %v666_v53 = vpop.eup %665  ;;  %v381_v55 = vor.u32 1.1754944e-38, %v380_v39  ;;  %673 = vrcp.f32 %v1003_v46  ;;  %v406_v61 = vand.u32 2147483647, %v1003_v46  ;;  %vm1021_vm0 = vcmp.eq.f32.partialorder %v392_v44, 8.507059e+37  ;;  %vm1032_vm3 = vmor %vm346_vm8, %vm347_vm14 }
  0x3a   :  { %v668_v57 = vpop.eup %667  ;;  %v343_v58 = vsub.f32 1.0, %v342_v48  ;;  %v356_v59 = vmul.f32 %v666_v53, %v976_v23  ;;  %v279_v60 = vrot.slane %v278_v52, 1  ;;  %v395_v1 = vor.u32 1.1754944e-38, %v394_v45 }
  0x3b   :  { %v1018_v62 = vpop.eup %669  ;;  %v370_v63 = vmul.f32 %v668_v57, %v982_v29  ;;  %vm402_vm1 = vweird.f32 %v1003_v46  ;;  %v408_v2 = vand.u32 2147483648, %v1003_v46  ;;  %vm361_vm2 = vweird.f32 %v666_v53 }
  0x3c   :  { %v672_v3 = vpop.eup %671  ;;  %v344_v9 = vmul.f32 %v664_v43, %v343_v58  ;;  %v357_v10 = vsub.f32 1.0, %v356_v59  ;;  %v1027_v11 = vadd.f32 %v279_v60, %v278_v52  ;;  %vm375_vm4 = vweird.f32 %v668_v57  ;;  %vm1045_vm7 = vmor %vm360_vm10, %vm361_vm2 }
  0x3d   :  { %v371_v17 = vsub.f32 1.0, %v370_v63  ;;  %v384_v18 = vmul.f32 %v672_v3, %v988_v37  ;;  %v282_v8 = vadd.f32 %v967_v16, %v281_v34  ;;  %vm389_vm5 = vweird.f32 %v672_v3  ;;  %vm1055_vm8 = vmor %vm374_vm11, %vm375_vm4 }
  0x3e   :  { %v345_v19 = vadd.f32 %v664_v43, %v344_v9  ;;  %v358_v20 = vmul.f32 %v666_v53, %v357_v10  ;;  %vm1038_vm6 = vcmp.eq.f32.partialorder %v406_v61, 8.507059e+37  ;;  %675 = vrcp.f32 %v1027_v11  ;;  %vm1070_vm11 = vmor %vm388_vm13, %vm389_vm5 }
  0x3f   :  { %v674_v7 = vpop.eup %673  ;;  %v372_v24 = vmul.f32 %v668_v57, %v371_v17  ;;  %v385_v26 = vsub.f32 1.0, %v384_v18  ;;  %v409_v27 = vor.u32 1.1754944e-38, %v408_v2  ;;  %v420_v30 = vand.u32 2147483647, %v1027_v11 }
  0x40   :  { %v349_v31 = vsel %vm1032_vm3, %v664_v43, %v345_v19  ;;  %v359_v33 = vadd.f32 %v666_v53, %v358_v20  ;;  %v398_v23 = vmul.f32 %v674_v7, %v1003_v46  ;;  %vm416_vm10 = vweird.f32 %v1027_v11 }
  0x41   :  { %v354_v35 = vsel %vm994_vm9, %v353_v42, %v349_v31  ;;  %v373_v14 = vadd.f32 %v668_v57, %v372_v24  ;;  %v386_v38 = vmul.f32 %v672_v3, %v385_v26  ;;  %v422_v39 = vand.u32 2147483648, %v1027_v11 }
  0x42   :  { %v363_v43 = vsel %vm1045_vm7, %v666_v53, %v359_v33  ;;  %v565_v29 = vmul.f32 %v906_v13, %v354_v35  ;;  %v399_v45 = vsub.f32 1.0, %v398_v23  ;;  %vm403_vm14 = vweird.f32 %v674_v7  ;;  %v1131_v33 = vld [vmem:[#allocation5 + $0x60] sm:$0xff]  ;;  %v1135_v23 = vld [vmem:[#allocation5 + $0x68] sm:$0xff] }
  0x43   :  { %v368_v40 = vsel %vm1006_vm12, %v367_v50, %v363_v43  ;;  %v377_v42 = vsel %vm1055_vm8, %v668_v57, %v373_v14  ;;  %v387_v48 = vadd.f32 %v672_v3, %v386_v38  ;;  %vm1078_vm9 = vcmp.eq.f32.partialorder %v420_v30, 8.507059e+37  ;;  %vm1091_vm12 = vmor %vm402_vm1, %vm403_vm14 }
  0x44   :  { %v283_v13 = vrot.slane %v282_v8, 2  ;;  %v676_v53 = vpop.eup %675  ;;  %v566_v37 = vmul.f32 %v910_v36, %v368_v40  ;;  %v382_v58 = vsel %vm1011_vm15, %v381_v55, %v377_v42  ;;  %v400_v59 = vmul.f32 %v674_v7, %v399_v45 }
  0x45   :  { %v287_v60 = vrot.slane %v1018_v62, 4  ;;  %v391_v49 = vsel %vm1070_vm11, %v672_v3, %v387_v48  ;;  %v567_v50 = vmul.f32 %v923_v41, %v382_v58  ;;  %v412_v61 = vmul.f32 %v676_v53, %v1027_v11 }
  0x46   :  { %vm417_vm13 = vweird.f32 %v676_v53  ;;  %v581_v36 = vpack.c.bf16 %v566_v37, %v565_v29  ;;  %v396_v54 = vsel %vm1021_vm0, %v395_v1, %v391_v49  ;;  %v401_v55 = vadd.f32 %v674_v7, %v400_v59  ;;  %v1151_v37 = vld [vmem:[#allocation5 + $0x70] sm:$0xff] }
  0x47   :  { %v284_v63 = vadd.f32 %v283_v13, %v282_v8  ;;  %v568_v2 = vmul.f32 %v939_v47, %v396_v54  ;;  %v413_v3 = vsub.f32 1.0, %v412_v61  ;;  %v288_v41 = vadd.f32 %v1018_v62, %v287_v60  ;;  %v1111_v8 = vld [vmem:[#allocation5 + $0x58] sm:$0xff]  ;;  %vm1116_vm15 = vmor %vm416_vm10, %vm417_vm13 }
  0x48   :  { %v154_v46 = vmax.f32 %v962_v6, %v153_v25  ;;  %589 = vst [vmem:[#allocation8] sm:$0xff] %v581_v36  ;;  %v405_v9 = vsel %vm1091_vm12, %v674_v7, %v401_v55  ;;  %v157_v5 = vrot.slane %v973_v12, 2  ;;  %v162_v0 = vmax.f32 %v965_v15, %v161_v32 }
  0x49   :  { %v285_v10 = vrot.slane %v284_v63, 1  ;;  %v582_v1 = vpack.c.bf16 %v568_v2, %v567_v50  ;;  %v410_v47 = vsel %vm1038_vm6, %v409_v27, %v405_v9  ;;  %v414_v17 = vmul.f32 %v676_v53, %v413_v3 }
  0x4a   :  { %v289_v18 = vrot.slane %v288_v41, 2  ;;  %v423_v25 = vor.u32 1.1754944e-38, %v422_v39  ;;  %v158_v32 = vmax.f32 %v973_v12, %v157_v5  ;;  %v205_v20 = vsub.f32 %v893_v4, %v154_v46 }
  0x4b   :  { %v1120_v19 = vadd.f32 %v285_v10, %v284_v63  ;;  %590 = vst [vmem:[#allocation8 + $0x8] sm:$0xff] %v582_v1  ;;  %v415_v21 = vadd.f32 %v676_v53, %v414_v17  ;;  %v569_v7 = vmul.f32 %v942_v51, %v410_v47  ;;  %v163_v24 = vrot.slane %v162_v0, 2 }
  0x4c   :  { %v290_v22 = vadd.f32 %v289_v18, %v288_v41  ;;  %v167_v27 = vrot.slane %v1111_v8, 4  ;;  %v159_v31 = vrot.slane %v158_v32, 1  ;;  %v229_v4 = vmul.f32 1.442695, %v205_v20  ;;  %v1177_v18 = vld [vmem:[#allocation5 + $0x78] sm:$0xff] }
  0x4d   :  { %677 = vrcp.f32 %v1120_v19  ;;  %v434_v11 = vand.u32 2147483647, %v1120_v19  ;;  %v436_v26 = vand.u32 2147483648, %v1120_v19  ;;  %v419_v30 = vsel %vm1116_vm15, %v676_v53, %v415_v21 }
  0x4e   :  { %v291_v12 = vrot.slane %v290_v22, 1  ;;  %v424_v51 = vsel %vm1078_vm9, %v423_v25, %v419_v30  ;;  %v164_v34 = vmax.f32 %v162_v0, %v163_v24  ;;  %v160_v38 = vmax.f32 %v158_v32, %v159_v31 }
  0x4f   :  { %v570_v35 = vmul.f32 %v948_v56, %v424_v51  ;;  %679 = vpow2.f32 %v229_v4  ;;  %vm430_vm0 = vweird.f32 %v1120_v19  ;;  %v168_v43 = vmax.f32 %v1111_v8, %v167_v27 }
  0x50   :  { %v1138_v14 = vadd.f32 %v291_v12, %v290_v22  ;;  %v165_v39 = vrot.slane %v164_v34, 1  ;;  %v173_v29 = vrot.slane %v1131_v33, 4  ;;  %vm1143_vm1 = vcmp.eq.f32.partialorder %v434_v11, 8.507059e+37 }
  0x51   :  { %v583_v44 = vpack.c.bf16 %v570_v35, %v569_v7  ;;  %v437_v40 = vor.u32 1.1754944e-38, %v436_v26  ;;  %v179_v56 = vrot.slane %v1135_v23, 4  ;;  %v206_v52 = vsub.f32 %v904_v28, %v160_v38 }
  0x52   :  { %681 = vrcp.f32 %v1138_v14  ;;  %v448_v48 = vand.u32 2147483647, %v1138_v14  ;;  %v166_v13 = vmax.f32 %v164_v34, %v165_v39  ;;  %v169_v53 = vrot.slane %v168_v43, 2 }
  0x53   :  { %v678_v42 = vpop.eup %677  ;;  %591 = vst [vmem:[#allocation8 + $0x10] sm:$0xff] %v583_v44  ;;  %vm444_vm2 = vweird.f32 %v1138_v14  ;;  %v450_v59 = vand.u32 2147483648, %v1138_v14  ;;  %v174_v60 = vmax.f32 %v1131_v33, %v173_v29  ;;  %v231_v49 = vmul.f32 1.442695, %v206_v52 }
  0x54   :  { %v426_v58 = vmul.f32 %v678_v42, %v1120_v19  ;;  %vm431_vm3 = vweird.f32 %v678_v42  ;;  %v170_v50 = vmax.f32 %v168_v43, %v169_v53  ;;  %v207_v57 = vsub.f32 %v965_v15, %v166_v13 }
  0x55   :  { %v1158_v61 = vpop.eup %679  ;;  %v175_v36 = vrot.slane %v174_v60, 2  ;;  %v180_v54 = vmax.f32 %v1135_v23, %v179_v56  ;;  %v185_v55 = vrot.slane %v1151_v37, 4  ;;  %vm1162_vm4 = vcmp.eq.f32.partialorder %v448_v48, 8.507059e+37  ;;  %vm1171_vm5 = vmor %vm430_vm0, %vm431_vm3 }
  0x56   :  { %v427_v28 = vsub.f32 1.0, %v426_v58  ;;  %683 = vpow2.f32 %v231_v49  ;;  %v293_v2 = vrot.slane %v1158_v61, 4  ;;  %v171_v3 = vrot.slane %v170_v50, 1 }
  0x57   :  { %v233_v41 = vmul.f32 1.442695, %v207_v57  ;;  %v176_v15 = vmax.f32 %v174_v60, %v175_v36  ;;  %v181_v10 = vrot.slane %v180_v54, 2  ;;  %v186_v5 = vmax.f32 %v1151_v37, %v185_v55 }
  0x58   :  { %v682_v46 = vpop.eup %681  ;;  %v428_v9 = vmul.f32 %v678_v42, %v427_v28  ;;  %v294_v47 = vadd.f32 %v1158_v61, %v293_v2  ;;  %v172_v17 = vmax.f32 %v170_v50, %v171_v3  ;;  %v191_v26 = vrot.slane %v1177_v18, 4 }
  0x59   :  { %v440_v1 = vmul.f32 %v682_v46, %v1138_v14  ;;  %vm445_vm6 = vweird.f32 %v682_v46  ;;  %685 = vpow2.f32 %v233_v41  ;;  %v177_v25 = vrot.slane %v176_v15, 1 }
  0x5a   :  { %v429_v6 = vadd.f32 %v678_v42, %v428_v9  ;;  %v182_v32 = vmax.f32 %v180_v54, %v181_v10  ;;  %v295_v21 = vrot.slane %v294_v47, 2  ;;  %v208_v19 = vsub.f32 %v1111_v8, %v172_v17  ;;  %vm1190_vm7 = vmor %vm444_vm2, %vm445_vm6 }
  0x5b   :  { %v441_v20 = vsub.f32 1.0, %v440_v1  ;;  %v187_v7 = vrot.slane %v186_v5, 2  ;;  %v178_v24 = vmax.f32 %v176_v15, %v177_v25  ;;  %v451_v51 = vor.u32 1.1754944e-38, %v450_v59 }
  0x5c   :  { %v433_v22 = vsel %vm1171_vm5, %v678_v42, %v429_v6  ;;  %v183_v11 = vrot.slane %v182_v32, 1  ;;  %v1183_v27 = vpop.eup %683  ;;  %v296_v31 = vadd.f32 %v295_v21, %v294_v47  ;;  %v235_v4 = vmul.f32 1.442695, %v208_v19 }
  0x5d   :  { %v438_v30 = vsel %vm1143_vm1, %v437_v40, %v433_v22  ;;  %v442_v12 = vmul.f32 %v682_v46, %v441_v20  ;;  %v299_v34 = vrot.slane %v1183_v27, 4  ;;  %v209_v38 = vsub.f32 %v1131_v33, %v178_v24 }
  0x5e   :  { %v184_v35 = vmax.f32 %v182_v32, %v183_v11  ;;  %v571_v43 = vmul.f32 %v967_v16, %v438_v30  ;;  %v297_v29 = vrot.slane %v296_v31, 1  ;;  %687 = vpow2.f32 %v235_v4 }
  0x5f   :  { %v443_v39 = vadd.f32 %v682_v46, %v442_v12  ;;  %v1197_v44 = vpop.eup %685  ;;  %v300_v45 = vadd.f32 %v1183_v27, %v299_v34  ;;  %v237_v40 = vmul.f32 1.442695, %v209_v38  ;;  %v188_v56 = vmax.f32 %v186_v5, %v187_v7 }
  0x60   :  { %v210_v14 = vsub.f32 %v1135_v23, %v184_v35  ;;  %v298_v48 = vadd.f32 %v297_v29, %v296_v31  ;;  %v305_v52 = vrot.slane %v1197_v44, 4  ;;  %v192_v33 = vmax.f32 %v1177_v18, %v191_v26 }
  0x61   :  { %v447_v42 = vsel %vm1190_vm7, %v682_v46, %v443_v39  ;;  %v301_v13 = vrot.slane %v300_v45, 2  ;;  %689 = vpow2.f32 %v237_v40  ;;  %v189_v60 = vrot.slane %v188_v56, 1 }
  0x62   :  { %v452_v16 = vsel %vm1162_vm4, %v451_v51, %v447_v42  ;;  %v239_v53 = vmul.f32 1.442695, %v210_v14  ;;  %691 = vrcp.f32 %v298_v48  ;;  %v306_v59 = vadd.f32 %v1197_v44, %v305_v52 }
  0x63   :  { %v572_v58 = vmul.f32 %v1018_v62, %v452_v16  ;;  %v302_v23 = vadd.f32 %v301_v13, %v300_v45  ;;  %v193_v57 = vrot.slane %v192_v33, 2  ;;  %v190_v41 = vmax.f32 %v188_v56, %v189_v60 }
  0x64   :  { %693 = vpow2.f32 %v239_v53  ;;  %v1209_v49 = vpop.eup %687  ;;  %v307_v36 = vrot.slane %v306_v59, 2  ;;  %vm458_vm8 = vweird.f32 %v298_v48  ;;  %v462_v0 = vand.u32 2147483647, %v298_v48 }
  0x65   :  { %v584_v50 = vpack.c.bf16 %v572_v58, %v571_v43  ;;  %v303_v28 = vrot.slane %v302_v23, 1  ;;  %v311_v54 = vrot.slane %v1209_v49, 4  ;;  %v194_v55 = vmax.f32 %v192_v33, %v193_v57 }
  0x66   :  { %v308_v62 = vadd.f32 %v307_v36, %v306_v59  ;;  %v211_v32 = vsub.f32 %v1151_v37, %v190_v41  ;;  %v464_v22 = vand.u32 2147483648, %v298_v48  ;;  %vm1222_vm11 = vcmp.eq.f32.partialorder %v462_v0, 8.507059e+37 }
  0x67   :  { %592 = vst [vmem:[#allocation8 + $0x18] sm:$0xff] %v584_v50  ;;  %v1212_v63 = vpop.eup %689  ;;  %v304_v2 = vadd.f32 %v303_v28, %v302_v23  ;;  %v312_v3 = vadd.f32 %v1209_v49, %v311_v54  ;;  %v195_v15 = vrot.slane %v194_v55, 1 }
  0x68   :  { %v692_v46 = vpop.eup %691  ;;  %v317_v9 = vrot.slane %v1212_v63, 4  ;;  %v309_v1 = vrot.slane %v308_v62, 1  ;;  %v241_v43 = vmul.f32 1.442695, %v211_v32  ;;  %v465_v29 = vor.u32 1.1754944e-38, %v464_v22 }
  0x69   :  { %v454_v5 = vmul.f32 %v692_v46, %v298_v48  ;;  %695 = vrcp.f32 %v304_v2  ;;  %v313_v47 = vrot.slane %v312_v3, 2  ;;  %vm459_vm10 = vweird.f32 %v692_v46 }
  0x6a   :  { %v1216_v10 = vpop.eup %693  ;;  %v318_v6 = vadd.f32 %v1212_v63, %v317_v9  ;;  %v310_v20 = vadd.f32 %v309_v1, %v308_v62  ;;  %v196_v19 = vmax.f32 %v194_v55, %v195_v15  ;;  %v476_v30 = vand.u32 2147483647, %v304_v2  ;;  %vm1227_vm14 = vmor %vm458_vm8, %vm459_vm10 }
  0x6b   :  { %v455_v17 = vsub.f32 1.0, %v454_v5  ;;  %v323_v25 = vrot.slane %v1216_v10, 4  ;;  %v314_v21 = vadd.f32 %v313_v47, %v312_v3  ;;  %v478_v8 = vand.u32 2147483648, %v304_v2 }
  0x6c   :  { %v319_v24 = vrot.slane %v318_v6, 2  ;;  %697 = vrcp.f32 %v310_v20  ;;  %v212_v39 = vsub.f32 %v1177_v18, %v196_v19  ;;  %vm472_vm9 = vweird.f32 %v304_v2 }
  0x6d   :  { %v456_v7 = vmul.f32 %v692_v46, %v455_v17  ;;  %v324_v11 = vadd.f32 %v1216_v10, %v323_v25  ;;  %v315_v12 = vrot.slane %v314_v21, 1  ;;  %vm1237_vm13 = vcmp.eq.f32.partialorder %v476_v30, 8.507059e+37 }
  0x6e   :  { %v320_v51 = vadd.f32 %v319_v24, %v318_v6  ;;  %v479_v48 = vor.u32 1.1754944e-38, %v478_v8  ;;  %v490_v52 = vand.u32 2147483647, %v310_v20  ;;  %v243_v53 = vmul.f32 1.442695, %v212_v39 }
  0x6f   :  { %v696_v31 = vpop.eup %695  ;;  %v457_v4 = vadd.f32 %v692_v46, %v456_v7  ;;  %v325_v34 = vrot.slane %v324_v11, 2  ;;  %v1231_v38 = vadd.f32 %v315_v12, %v314_v21  ;;  %v492_v60 = vand.u32 2147483648, %v310_v20 }
  0x70   :  { %v468_v35 = vmul.f32 %v696_v31, %v304_v2  ;;  %v321_v45 = vrot.slane %v320_v51, 1  ;;  %vm473_vm12 = vweird.f32 %v696_v31  ;;  %vm486_vm0 = vweird.f32 %v310_v20 }
  0x71   :  { %v326_v14 = vadd.f32 %v325_v34, %v324_v11  ;;  %v461_v40 = vsel %vm1227_vm14, %v692_v46, %v457_v4  ;;  %699 = vrcp.f32 %v1231_v38  ;;  %vm1246_vm15 = vmor %vm472_vm9, %vm473_vm12  ;;  %v504_v50 = vand.u32 2147483647, %v1231_v38 }
  0x72   :  { %v469_v56 = vsub.f32 1.0, %v468_v35  ;;  %v1241_v33 = vadd.f32 %v321_v45, %v320_v51  ;;  %v698_v18 = vpop.eup %697  ;;  %701 = vpow2.f32 %v241_v43  ;;  %v466_v58 = vsel %vm1222_vm11, %v465_v29, %v461_v40 }
  0x73   :  { %v327_v13 = vrot.slane %v326_v14, 1  ;;  %v482_v59 = vmul.f32 %v698_v18, %v310_v20  ;;  %v506_v28 = vand.u32 2147483648, %v1231_v38  ;;  %vm487_vm1 = vweird.f32 %v698_v18 }
  0x74   :  { %v470_v16 = vmul.f32 %v696_v31, %v469_v56  ;;  %703 = vrcp.f32 %v1241_v33  ;;  %v573_v62 = vmul.f32 %v1158_v61, %v466_v58  ;;  %vm1258_vm2 = vcmp.eq.f32.partialorder %v490_v52, 8.507059e+37  ;;  %vm1269_vm3 = vmor %vm486_vm0, %vm487_vm1 }
  0x75   :  { %v1252_v36 = vadd.f32 %v327_v13, %v326_v14  ;;  %v483_v54 = vsub.f32 1.0, %v482_v59  ;;  %705 = vpow2.f32 %v243_v53  ;;  %v493_v9 = vor.u32 1.1754944e-38, %v492_v60 }
  0x76   :  { %v471_v57 = vadd.f32 %v696_v31, %v470_v16  ;;  %vm500_vm4 = vweird.f32 %v1231_v38  ;;  %vm1274_vm5 = vcmp.eq.f32.partialorder %v504_v50, 8.507059e+37  ;;  %v507_v47 = vor.u32 1.1754944e-38, %v506_v28 }
  0x77   :  { %v700_v55 = vpop.eup %699  ;;  %707 = vrcp.f32 %v1252_v36  ;;  %v484_v46 = vmul.f32 %v698_v18, %v483_v54  ;;  %vm514_vm7 = vweird.f32 %v1241_v33  ;;  %v520_v21 = vand.u32 2147483648, %v1241_v33 }
  0x78   :  { %v475_v2 = vsel %vm1246_vm15, %v696_v31, %v471_v57  ;;  %v496_v15 = vmul.f32 %v700_v55, %v1231_v38  ;;  %v1266_v5 = vpop.eup %701  ;;  %vm501_vm6 = vweird.f32 %v700_v55  ;;  %vm528_vm8 = vweird.f32 %v1252_v36 }
  0x79   :  { %v480_v41 = vsel %vm1237_vm13, %v479_v48, %v475_v2  ;;  %v485_v17 = vadd.f32 %v698_v18, %v484_v46  ;;  %v329_v25 = vrot.slane %v1266_v5, 4  ;;  %vm1293_vm10 = vmor %vm500_vm4, %vm501_vm6  ;;  %v532_v12 = vand.u32 2147483647, %v1252_v36 }
  0x7a   :  { %v574_v0 = vmul.f32 %v1183_v27, %v480_v41  ;;  %v497_v6 = vsub.f32 1.0, %v496_v15  ;;  %v704_v32 = vpop.eup %703  ;;  %v518_v27 = vand.u32 2147483647, %v1241_v33  ;;  %v534_v35 = vand.u32 2147483648, %v1252_v36 }
  0x7b   :  { %v1282_v19 = vpop.eup %705  ;;  %v489_v7 = vsel %vm1269_vm3, %v698_v18, %v485_v17  ;;  %v510_v24 = vmul.f32 %v704_v32, %v1241_v33  ;;  %v330_v31 = vadd.f32 %v1266_v5, %v329_v25  ;;  %vm515_vm11 = vweird.f32 %v704_v32 }
  0x7c   :  { %v585_v20 = vpack.c.bf16 %v574_v0, %v573_v62  ;;  %v498_v22 = vmul.f32 %v700_v55, %v497_v6  ;;  %v494_v26 = vsel %vm1258_vm2, %v493_v9, %v489_v7  ;;  %v335_v4 = vrot.slane %v1282_v19, 4  ;;  %vm1310_vm9 = vmor %vm514_vm7, %vm515_vm11 }
  0x7d   :  { %v708_v11 = vpop.eup %707  ;;  %v511_v8 = vsub.f32 1.0, %v510_v24  ;;  %v575_v34 = vmul.f32 %v1197_v44, %v494_v26  ;;  %v331_v38 = vrot.slane %v330_v31, 2  ;;  %v521_v44 = vor.u32 1.1754944e-38, %v520_v21 }
  0x7e   :  { %593 = vst [vmem:[#allocation8 + $0x20] sm:$0xff] %v585_v20  ;;  %v499_v37 = vadd.f32 %v700_v55, %v498_v22  ;;  %v524_v51 = vmul.f32 %v708_v11, %v1252_v36  ;;  %v336_v39 = vadd.f32 %v1282_v19, %v335_v4  ;;  %vm529_vm14 = vweird.f32 %v708_v11 }
  0x7f   :  { %v512_v29 = vmul.f32 %v704_v32, %v511_v8  ;;  %v332_v56 = vadd.f32 %v331_v38, %v330_v31  ;;  %vm519_vm12 = vcmp.eq.f32.partialorder %v518_v27, 8.507059e+37  ;;  %vm530_vm13 = vmor %vm528_vm8, %vm529_vm14  ;;  %v535_v16 = vor.u32 1.1754944e-38, %v534_v35 }
  0x80   :  { %v503_v43 = vsel %vm1293_vm10, %v700_v55, %v499_v37  ;;  %v525_v45 = vsub.f32 1.0, %v524_v51  ;;  %v337_v42 = vrot.slane %v336_v39, 2  ;;  %vm533_vm15 = vcmp.eq.f32.partialorder %v532_v12, 8.507059e+37 }
  0x81   :  { %v508_v14 = vsel %vm1274_vm5, %v507_v47, %v503_v43  ;;  %v513_v52 = vadd.f32 %v704_v32, %v512_v29  ;;  %v333_v13 = vrot.slane %v332_v56, 1 }
  0x82   :  { %v576_v48 = vmul.f32 %v1209_v49, %v508_v14  ;;  %v526_v18 = vmul.f32 %v708_v11, %v525_v45  ;;  %v338_v53 = vadd.f32 %v337_v42, %v336_v39 }
  0x83   :  { %v517_v33 = vsel %vm1310_vm9, %v704_v32, %v513_v52  ;;  %v334_v60 = vadd.f32 %v333_v13, %v332_v56 }
  0x84   :  { %v586_v58 = vpack.c.bf16 %v576_v48, %v575_v34  ;;  %v527_v23 = vadd.f32 %v708_v11, %v526_v18  ;;  %v522_v59 = vsel %vm519_vm12, %v521_v44, %v517_v33  ;;  %v339_v50 = vrot.slane %v338_v53, 1 }
  0x85   :  { %v577_v57 = vmul.f32 %v1212_v63, %v522_v59  ;;  %709 = vrcp.f32 %v334_v60  ;;  %vm542_vm0 = vweird.f32 %v334_v60  ;;  %v548_v41 = vand.u32 2147483648, %v334_v60 }
  0x86   :  { %594 = vst [vmem:[#allocation8 + $0x28] sm:$0xff] %v586_v58  ;;  %v531_v49 = vsel %vm530_vm13, %v708_v11, %v527_v23  ;;  %v340_v54 = vadd.f32 %v339_v50, %v338_v53  ;;  %v546_v9 = vand.u32 2147483647, %v334_v60 }
  0x87   :  { %v536_v28 = vsel %vm533_vm15, %v535_v16, %v531_v49 }
  0x88   :  { %v578_v36 = vmul.f32 %v1216_v10, %v536_v28  ;;  %711 = vrcp.f32 %v340_v54  ;;  %vm556_vm2 = vweird.f32 %v340_v54  ;;  %v562_v0 = vand.u32 2147483648, %v340_v54 }
  0x89   :  { %v560_v61 = vand.u32 2147483647, %v340_v54  ;;  %v549_v10 = vor.u32 1.1754944e-38, %v548_v41  ;;  %vm547_vm5 = vcmp.eq.f32.partialorder %v546_v9, 8.507059e+37 }
  0x8a   :  { %v587_v55 = vpack.c.bf16 %v578_v36, %v577_v57  ;;  %v563_v6 = vor.u32 1.1754944e-38, %v562_v0 }
  0x8b   :  { %v710_v2 = vpop.eup %709  ;;  %vm561_vm7 = vcmp.eq.f32.partialorder %v560_v61, 8.507059e+37 }
  0x8c   :  { %595 = vst [vmem:[#allocation8 + $0x30] sm:$0xff] %v587_v55  ;;  %v538_v62 = vmul.f32 %v710_v2, %v334_v60  ;;  %vm543_vm1 = vweird.f32 %v710_v2 }
  0x8d   :  { %vm544_vm4 = vmor %vm542_vm0, %vm543_vm1 }
  0x8e   :  { %v712_v3 = vpop.eup %711  ;;  %v539_v46 = vsub.f32 1.0, %v538_v62 }
  0x8f   :  { %v552_v15 = vmul.f32 %v712_v3, %v340_v54  ;;  %vm557_vm3 = vweird.f32 %v712_v3 }
  0x90   :  { %v540_v63 = vmul.f32 %v710_v2, %v539_v46  ;;  %vm558_vm6 = vmor %vm556_vm2, %vm557_vm3 }
  0x91   :  { %v553_v1 = vsub.f32 1.0, %v552_v15 }
  0x92   :  { %v541_v47 = vadd.f32 %v710_v2, %v540_v63 }
  0x93   :  { %v554_v17 = vmul.f32 %v712_v3, %v553_v1 }
  0x94   :  { %v545_v25 = vsel %vm544_vm4, %v710_v2, %v541_v47 }
  0x95   :  { %v555_v32 = vadd.f32 %v712_v3, %v554_v17  ;;  %v550_v20 = vsel %vm547_vm5, %v549_v10, %v545_v25 }
  0x96   :  { %v579_v21 = vmul.f32 %v1266_v5, %v550_v20 }
  0x97   :  { %v559_v27 = vsel %vm558_vm6, %v712_v3, %v555_v32 }
  0x98   :  { %v564_v7 = vsel %vm561_vm7, %v563_v6, %v559_v27 }
  0x99   :  { %v580_v22 = vmul.f32 %v1282_v19, %v564_v7 }
  0x9b   :  { %v588_v24 = vpack.c.bf16 %v580_v22, %v579_v21 }
  0x9d   :  { %596 = vst [vmem:[#allocation8 + $0x38] sm:$0xff] %v588_v24 }
  0x9e   :  { %620 = dma.vmem_to_hbm [thread:$0]  %s613_s27, 1024, %s615_s30, [#allocation9], %s823_s4, %s823_s4, %s824_s5  }
  0x9f   :  { %813 = dma.done.wait [#allocation4], 256  }
  0xa0   :  { %814 = vsyncadd [#allocation4], 4294967040 }
  0xa1   :  { %815 = dma.done.wait [#allocation9], 1024  }
  0xa2   :  { %816 = vsyncadd [#allocation9], 4294966272 }
  0xa3   :  { %629 = vsyncpa [#allocation3], 1 }
  0xa4   :  { %630 = vsyncpa [#allocation6], 1 }
  0xa5   :  { %631 = vsyncpa [#allocation4], 1 }
  0xa6   :  { %632 = vsyncpa [#allocation9], 1 }

</bundles_post_ra>
